<compile_context>
chip_gen: v7x
topology: tpu7x:2x2x1
jax: 0.10.0
libtpu: 0.0.40
codegen_flags: <defaults>
</compile_context>

<pallas_src>
import math

import jax
import jax.numpy as jnp
from jax.experimental import pallas as pl
from jax.experimental.pallas import tpu as pltpu


# ----------------------------------------------------------------------------- kernel
def _make_kernel(num_blocks, kernel_size, stride, block_b, in_lens, out_lens, in_chs):
    """Kernel body.  All scratch is f32; only MXU operands are cast to bf16."""

    def kernel(*refs):
        x_ref = refs[0]                               # (block_b, L, Cin)       f32 (pre-noised)
        conv_refs = refs[1:1 + 2 * num_blocks]        # pairs: w (K*c_in, c_out) bf16, b (1, c_out) f32
        w1x1_ref = refs[1 + 2 * num_blocks]           # (C_last, E) bf16
        b1x1_ref = refs[2 + 2 * num_blocks]           # (1, E) f32
        out_ref = refs[3 + 2 * num_blocks]            # (1, block_b, E) f32
        sc = refs[4 + 2 * num_blocks:]
        in_buf = sc[0]                                # (block_b*L, Cin) f32
        act_bufs = sc[1:1 + num_blocks]               # (block_b*l_out_i, c_out_i) f32
        col_bufs = sc[1 + num_blocks:]                # (block_b*l_out_i, K*c_in_i) f32

        # Stage the input block as a flat (block_b*L, Cin) slab so every level uses the
        # same 2-D strided-tap read pattern.
        for b in range(block_b):
            in_buf[pl.ds(b * in_lens[0], in_lens[0]), :] = x_ref[b]

        for i in range(num_blocks):
            c_in, l_in, l_out = in_chs[i], in_lens[i], out_lens[i]
            src = in_buf if i == 0 else act_bufs[i - 1]
            col = col_bufs[i]
            # im2col: the K strided taps land side-by-side and the batch is folded along
            # rows, so the whole conv level is a single
            # (block_b*l_out, K*c_in) x (K*c_in, c_out) MXU dot.
            for b in range(block_b):
                for k in range(kernel_size):
                    col[pl.ds(b * l_out, l_out), pl.ds(k * c_in, c_in)] = (
                        src[pl.ds(b * l_in + k, l_out, stride=stride), :])
            w = conv_refs[2 * i][...]                 # (K*c_in, c_out) bf16
            bias = conv_refs[2 * i + 1][...]          # (1, c_out)      f32
            acc = jnp.dot(col[...].astype(jnp.bfloat16), w,
                          preferred_element_type=jnp.float32)
            # normalization='none' -> no BatchNorm; ReLU; Dropout is identity at eval.
            # TODO(synk): training-mode dropout (p=0.2) is not modelled.
            act_bufs[i][...] = jnp.maximum(acc + bias, 0.0)

        # F.max_pool1d over the full remaining length, all batch elements at once: row
        # b*l_last + j, so stride-l_last reads give a (block_b, C_last) slab per tap j.
        l_last = out_lens[-1]
        h_last = act_bufs[num_blocks - 1]
        pooled = h_last[pl.ds(0, block_b, stride=l_last), :]
        for j in range(1, l_last):
            pooled = jnp.maximum(pooled, h_last[pl.ds(j, block_b, stride=l_last), :])

        # 1x1 conv == dense over channels; one dot and one dense (block_b, E) store.
        emb = jnp.dot(pooled.astype(jnp.bfloat16), w1x1_ref[...],
                      preferred_element_type=jnp.float32) + b1x1_ref[...]
        out_ref[0] = emb.astype(out_ref.dtype)

    return kernel


# ------------------------------------------------------------------------- sizing utils
def _padded_nbytes(shape, dtype):
    """VMEM footprint including (8,128)/(16,128) tile padding."""
    itemsize = jnp.dtype(dtype).itemsize
    sublane = 8 * max(1, 4 // itemsize)
    if len(shape) == 0:
        lead, rows, cols = 1, 1, 1
    elif len(shape) == 1:
        lead, rows, cols = 1, 1, shape[0]
    else:
        rows, cols = shape[-2], shape[-1]
        lead = math.prod(shape[:-2]) if len(shape) > 2 else 1
    rows_p = -(-rows // sublane) * sublane
    cols_p = -(-cols // 128) * 128
    return lead * rows_p * cols_p * itemsize


def _conv_geometry(L, kernel_size, stride, conv_params, Cin):
    in_lens, out_lens = [], []
    l = L
    for _ in conv_params:
        in_lens.append(l)
        l = (l - kernel_size) // stride + 1
        assert l >= 1, "sequence too short for the conv stack"
        out_lens.append(l)
    in_chs = [Cin] + [w.shape[-1] for (w, _) in conv_params[:-1]]
    out_chs = [w.shape[-1] for (w, _) in conv_params]
    return in_lens, out_lens, in_chs, out_chs


def _vmem_footprint(block_b, L, Cin, E, in_lens, out_lens, in_chs, out_chs,
                    kernel_size, weight_bytes):
    est = 2 * _padded_nbytes((block_b, L, Cin), jnp.float32)       # double-buffered input block
    est += 2 * _padded_nbytes((1, block_b, E), jnp.float32)        # double-buffered output block
    est += weight_bytes                                            # grid-invariant weights (single)
    est += _padded_nbytes((block_b * L, Cin), jnp.float32)         # in_buf
    for lo, co in zip(out_lens, out_chs):
        est += _padded_nbytes((block_b * lo, co), jnp.float32)     # activation scratch
    for lo, ci in zip(out_lens, in_chs):
        est += _padded_nbytes((block_b * lo, kernel_size * ci), jnp.float32)  # im2col scratch
    return est


def _choose_block_b(B, footprint_fn, budget_bytes, max_block_b=64):
    """Largest divisor of B that fits the VMEM budget; prefer >= 2 (even) grid steps
    so the 'parallel' axis can split across both v7x TensorCores.  max_block_b bounds
    the static unroll of the im2col copy loop."""
    divisors = sorted((d for d in range(1, B + 1) if B % d == 0), reverse=True)
    fits = lambda d: d <= max_block_b and footprint_fn(d) <= budget_bytes
    preds = (
        lambda d: fits(d) and B // d >= 2 and (B // d) % 2 == 0,
        lambda d: fits(d) and B // d >= 2,
        lambda d: fits(d),
    )
    for pred in preds:
        for d in divisors:
            if pred(d):
                return d
    return 1


# ------------------------------------------------------------------------------ wrapper
def conv_encoder_pallas(xn, conv_params, conv1x1_params, kernel_size, stride, block_b=None):
    """ConvEncoder forward on a (B, L, Cin) channels-last input.

    conv_params:    list of (w, b) with w (K, c_in, c_out) == torch_w.permute(2, 1, 0),
                    b (1, c_out).
    conv1x1_params: (w1x1 (C_last, E) == torch_w1x1[:, :, 0].T, b1x1 (1, E)).
    Returns (B, E).
    """
    xn = xn.astype(jnp.float32)
    B, L, Cin = xn.shape
    num_blocks = len(conv_params)
    in_lens, out_lens, in_chs, out_chs = _conv_geometry(L, kernel_size, stride,
                                                        conv_params, Cin)

    # bf16 weights, (K, c_in, c_out) flattened to (K*c_in, c_out) to match the im2col
    # column layout; biases stay f32 (added to the f32 accumulator).
    conv_ws = [w.reshape(kernel_size * w.shape[1], w.shape[2]).astype(jnp.bfloat16)
               for (w, _) in conv_params]
    conv_bs = [b.reshape(1, -1).astype(jnp.float32) for (_, b) in conv_params]
    w1x1, b1x1 = conv1x1_params
    w1x1 = w1x1.astype(jnp.bfloat16)                                # (C_last, E)
    b1x1 = b1x1.reshape(1, -1).astype(jnp.float32)                  # (1, E)
    E = w1x1.shape[1]

    weight_bytes = sum(_padded_nbytes(a.shape, a.dtype)
                       for a in conv_ws + conv_bs + [w1x1, b1x1])
    footprint = lambda bb: _vmem_footprint(bb, L, Cin, E, in_lens, out_lens, in_chs,
                                           out_chs, kernel_size, weight_bytes)
    if block_b is None:
        # 40 MiB budget: headroom under v7x's 64 MiB/TC, far below v5e/v6e's 128 MiB.
        block_b = _choose_block_b(B, footprint, 40 << 20)
    assert B % block_b == 0, (B, block_b)
    n_groups = B // block_b

    in_arrays = [xn]
    in_specs = [pl.BlockSpec((block_b, L, Cin), lambda g: (g, 0, 0))]
    for w, b in zip(conv_ws, conv_bs):
        in_arrays += [w, b]
        # Constant index maps: the weight blocks never change across the grid.  (The
        # redundant second pipeline buffer is only a few KiB, so default buffering is
        # kept for compile safety; the VMEM estimate counts them once.)
        in_specs += [pl.BlockSpec(w.shape, lambda g: (0, 0)),
                     pl.BlockSpec(b.shape, lambda g: (0, 0))]
    in_arrays += [w1x1, b1x1]
    in_specs += [pl.BlockSpec(w1x1.shape, lambda g: (0, 0)),
                 pl.BlockSpec(b1x1.shape, lambda g: (0, 0))]

    scratch_shapes = [pltpu.VMEM((block_b * L, Cin), jnp.float32)]
    scratch_shapes += [pltpu.VMEM((block_b * out_lens[i], out_chs[i]), jnp.float32)
                       for i in range(num_blocks)]
    scratch_shapes += [pltpu.VMEM((block_b * out_lens[i], kernel_size * in_chs[i]),
                                  jnp.float32)
                       for i in range(num_blocks)]

    vmem_limit = int(min(max(2 * footprint(block_b), 16 << 20), 48 << 20))

    out = pl.pallas_call(
        _make_kernel(num_blocks, kernel_size, stride, block_b,
                     tuple(in_lens), tuple(out_lens), tuple(in_chs)),
        out_shape=jax.ShapeDtypeStruct((n_groups, block_b, E), jnp.float32),
        grid=(n_groups,),
        in_specs=in_specs,
        out_specs=pl.BlockSpec((1, block_b, E), lambda g: (g, 0, 0)),
        scratch_shapes=scratch_shapes,
        compiler_params=pltpu.CompilerParams(
            dimension_semantics=("parallel",),
            vmem_limit_bytes=vmem_limit),
    )(*in_arrays)

    return out.reshape(B, E)


def diffusion_encoder_forward(x, noise_key, noise_schedule, conv_params, conv1x1_params,
                              kernel_size, stride, block_b=None):
    """DiffusionEncoder forward.  x: (B, L, num_inputs).  Returns (B, E, 1) like torch.

    The 100 sequential steps x += randn_like(x) * schedule[t] sum to one Gaussian with
    std sqrt(sum(schedule^2)); it is drawn once here (statistically equivalent, not
    bitwise identical to torch's per-step RNG stream) and pre-added so the kernel only
    streams a single (B, L, Cin) tensor -- no (T, B, L, Cin) noise ever touches HBM.
    """
    total_std = jnp.sqrt(jnp.sum(noise_schedule.astype(jnp.float32) ** 2))
    xn = x.astype(jnp.float32) + total_std * jax.random.normal(noise_key, x.shape,
                                                               dtype=jnp.float32)
    emb = conv_encoder_pallas(xn, conv_params, conv1x1_params, kernel_size, stride,
                              block_b)
    return emb[:, :, None]


# ---------------------------------------------------------------------------- reference
def _reference_forward(xn, conv_params, conv1x1_params, kernel_size, stride):
    """Pure-JAX f32 reference of the ConvEncoder (sanity check only)."""
    h = xn
    for (w, b) in conv_params:
        l_in = h.shape[1]
        l_out = (l_in - kernel_size) // stride + 1
        taps = [h[:, k:k + (l_out - 1) * stride + 1:stride, :] for k in range(kernel_size)]
        cols = jnp.concatenate(taps, axis=-1)                       # (B, l_out, K*c_in)
        w2d = w.reshape(kernel_size * w.shape[1], w.shape[2])
        h = jax.nn.relu(jnp.einsum("blm,mo->blo", cols, w2d) + b.reshape(1, 1, -1))
    pooled = jnp.max(h, axis=1)                                     # (B, C_last)
    w1, b1 = conv1x1_params
    return pooled @ w1 + b1.reshape(1, -1)                          # (B, E)


# --------------------------------------------------------------------------------- main
if __name__ == "__main__":
    B, L = 4, 16
    num_inputs = 4
    num_channels = (8, 16)
    embedding_dim = 32
    kernel_size = 3
    stride = 2
    timesteps = 100

    root = jax.random.PRNGKey(0)
    k_x, k_noise, k_p = jax.random.split(root, 3)

    x = jax.random.normal(k_x, (B, L, num_inputs), dtype=jnp.float32)
    noise_schedule = jnp.linspace(1e-4, 0.02, timesteps, dtype=jnp.float32)

    # Deterministic parameter init (PyTorch Conv1d-style uniform fan-in bounds),
    # weights already stored as (K, c_in, c_out) == torch_w.permute(2, 1, 0).
    conv_params = []
    cin = num_inputs
    pkeys = jax.random.split(k_p, len(num_channels) + 1)
    for i, cout in enumerate(num_channels):
        wk, bk = jax.random.split(pkeys[i])
        bound = 1.0 / math.sqrt(cin * kernel_size)
        w = jax.random.uniform(wk, (kernel_size, cin, cout),
                               minval=-bound, maxval=bound, dtype=jnp.float32)
        bvec = jax.random.uniform(bk, (1, cout),
                                  minval=-bound, maxval=bound, dtype=jnp.float32)
        conv_params.append((w, bvec))
        cin = cout
    wk, bk = jax.random.split(pkeys[-1])
    bound = 1.0 / math.sqrt(cin)
    w1x1 = jax.random.uniform(wk, (cin, embedding_dim),
                              minval=-bound, maxval=bound, dtype=jnp.float32)
    b1x1 = jax.random.uniform(bk, (1, embedding_dim),
                              minval=-bound, maxval=bound, dtype=jnp.float32)

    out = diffusion_encoder_forward(x, k_noise, noise_schedule, conv_params,
                                    (w1x1, b1x1), kernel_size, stride)
    out = jax.block_until_ready(out)
    assert out.shape == (B, embedding_dim, 1), out.shape
    assert bool(jnp.all(jnp.isfinite(out)))

    # Sanity check against the pure-JAX f32 reference on the same noised input
    # (bf16 MXU operands in the kernel -> loose tolerance).
    total_std = jnp.sqrt(jnp.sum(noise_schedule ** 2))
    xn = x + total_std * jax.random.normal(k_noise, x.shape, dtype=jnp.float32)
    ref = _reference_forward(xn, conv_params, (w1x1, b1x1), kernel_size, stride)
    err = float(jnp.max(jnp.abs(out[:, :, 0] - ref)))
    assert err < 3e-2, f"max abs error vs reference: {err}"

    print("KERNEL_OK")
</pallas_src>

<mosaic_0001>
module attributes {stable_mosaic.version = 11 : i64} {
  func.func @kernel(%arg0: i32, %arg1: memref<2x16x4xf32, #tpu.memory_space<vmem>>, %arg2: memref<12x8xbf16, #tpu.memory_space<vmem>>, %arg3: memref<1x8xf32, #tpu.memory_space<vmem>>, %arg4: memref<24x16xbf16, #tpu.memory_space<vmem>>, %arg5: memref<1x16xf32, #tpu.memory_space<vmem>>, %arg6: memref<16x32xbf16, #tpu.memory_space<vmem>>, %arg7: memref<1x32xf32, #tpu.memory_space<vmem>>, %arg8: memref<1x2x32xf32, #tpu.memory_space<vmem>>, %arg9: memref<32x4xf32, #tpu.memory_space<vmem>>, %arg10: memref<14x8xf32, #tpu.memory_space<vmem>>, %arg11: memref<6x16xf32, #tpu.memory_space<vmem>>, %arg12: memref<14x12xf32, #tpu.memory_space<vmem>>, %arg13: memref<6x24xf32, #tpu.memory_space<vmem>>) attributes {dimension_semantics = [#tpu.dimension_semantics<parallel>], iteration_bounds = array<i64: 2>, scalar_prefetch = 0 : i64, scratch_operands = 5 : i64, tpu.core_type = #tpu.core_type<tc>, window_params = [{transform_indices = @transform_0, window_bounds = array<i64: 2, 16, 4>}, {pipeline_mode = #tpu.pipeline_mode<synchronous>, transform_indices = @transform_1, window_bounds = array<i64: 12, 8>}, {pipeline_mode = #tpu.pipeline_mode<synchronous>, transform_indices = @transform_2, window_bounds = array<i64: 1, 8>}, {pipeline_mode = #tpu.pipeline_mode<synchronous>, transform_indices = @transform_3, window_bounds = array<i64: 24, 16>}, {pipeline_mode = #tpu.pipeline_mode<synchronous>, transform_indices = @transform_4, window_bounds = array<i64: 1, 16>}, {pipeline_mode = #tpu.pipeline_mode<synchronous>, transform_indices = @transform_5, window_bounds = array<i64: 16, 32>}, {pipeline_mode = #tpu.pipeline_mode<synchronous>, transform_indices = @transform_6, window_bounds = array<i64: 1, 32>}, {transform_indices = @transform_7, window_bounds = array<i64: 1, 2, 32>}]} {
    %c0 = arith.constant 0 : index
    %c0_0 = arith.constant 0 : index
    %c0_1 = arith.constant 0 : index
    %0 = vector.load %arg1[%c0, %c0_0, %c0_1] : memref<2x16x4xf32, #tpu.memory_space<vmem>>, vector<1x16x4xf32>
    %1 = vector.shape_cast %0 : vector<1x16x4xf32> to vector<16x4xf32>
    %c0_2 = arith.constant 0 : index
    %c0_3 = arith.constant 0 : index
    %2 = vector.load %arg9[%c0_2, %c0_3] : memref<32x4xf32, #tpu.memory_space<vmem>>, vector<16x4xf32>
    tpu.vector_store %arg9[%c0_2, %c0_3], %1 {strides = array<i32>} : memref<32x4xf32, #tpu.memory_space<vmem>>, vector<16x4xf32>,
    %c1 = arith.constant 1 : index
    %c0_4 = arith.constant 0 : index
    %c0_5 = arith.constant 0 : index
    %3 = vector.load %arg1[%c1, %c0_4, %c0_5] : memref<2x16x4xf32, #tpu.memory_space<vmem>>, vector<1x16x4xf32>
    %4 = vector.shape_cast %3 : vector<1x16x4xf32> to vector<16x4xf32>
    %c16 = arith.constant 16 : index
    %c0_6 = arith.constant 0 : index
    %5 = vector.load %arg9[%c16, %c0_6] : memref<32x4xf32, #tpu.memory_space<vmem>>, vector<16x4xf32>
    tpu.vector_store %arg9[%c16, %c0_6], %4 {strides = array<i32>} : memref<32x4xf32, #tpu.memory_space<vmem>>, vector<16x4xf32>,
    %c0_7 = arith.constant 0 : index
    %c0_8 = arith.constant 0 : index
    %6 = tpu.strided_load %arg9[%c0_7, %c0_8] {strides = array<i32: 2, 1>} : memref<32x4xf32, #tpu.memory_space<vmem>>, vector<7x4xf32>
    %c0_9 = arith.constant 0 : index
    %c0_10 = arith.constant 0 : index
    %7 = vector.load %arg12[%c0_9, %c0_10] : memref<14x12xf32, #tpu.memory_space<vmem>>, vector<7x4xf32>
    tpu.vector_store %arg12[%c0_9, %c0_10], %6 {strides = array<i32>} : memref<14x12xf32, #tpu.memory_space<vmem>>, vector<7x4xf32>,
    %c1_11 = arith.constant 1 : index
    %c0_12 = arith.constant 0 : index
    %8 = tpu.strided_load %arg9[%c1_11, %c0_12] {strides = array<i32: 2, 1>} : memref<32x4xf32, #tpu.memory_space<vmem>>, vector<7x4xf32>
    %c0_13 = arith.constant 0 : index
    %c4 = arith.constant 4 : index
    %9 = vector.load %arg12[%c0_13, %c4] : memref<14x12xf32, #tpu.memory_space<vmem>>, vector<7x4xf32>
    tpu.vector_store %arg12[%c0_13, %c4], %8 {strides = array<i32>} : memref<14x12xf32, #tpu.memory_space<vmem>>, vector<7x4xf32>,
    %c2 = arith.constant 2 : index
    %c0_14 = arith.constant 0 : index
    %10 = tpu.strided_load %arg9[%c2, %c0_14] {strides = array<i32: 2, 1>} : memref<32x4xf32, #tpu.memory_space<vmem>>, vector<7x4xf32>
    %c0_15 = arith.constant 0 : index
    %c8 = arith.constant 8 : index
    %11 = vector.load %arg12[%c0_15, %c8] : memref<14x12xf32, #tpu.memory_space<vmem>>, vector<7x4xf32>
    tpu.vector_store %arg12[%c0_15, %c8], %10 {strides = array<i32>} : memref<14x12xf32, #tpu.memory_space<vmem>>, vector<7x4xf32>,
    %c16_16 = arith.constant 16 : index
    %c0_17 = arith.constant 0 : index
    %12 = tpu.strided_load %arg9[%c16_16, %c0_17] {strides = array<i32: 2, 1>} : memref<32x4xf32, #tpu.memory_space<vmem>>, vector<7x4xf32>
    %c7 = arith.constant 7 : index
    %c0_18 = arith.constant 0 : index
    %13 = vector.load %arg12[%c7, %c0_18] : memref<14x12xf32, #tpu.memory_space<vmem>>, vector<7x4xf32>
    tpu.vector_store %arg12[%c7, %c0_18], %12 {strides = array<i32>} : memref<14x12xf32, #tpu.memory_space<vmem>>, vector<7x4xf32>,
    %c17 = arith.constant 17 : index
    %c0_19 = arith.constant 0 : index
    %14 = tpu.strided_load %arg9[%c17, %c0_19] {strides = array<i32: 2, 1>} : memref<32x4xf32, #tpu.memory_space<vmem>>, vector<7x4xf32>
    %c7_20 = arith.constant 7 : index
    %c4_21 = arith.constant 4 : index
    %15 = vector.load %arg12[%c7_20, %c4_21] : memref<14x12xf32, #tpu.memory_space<vmem>>, vector<7x4xf32>
    tpu.vector_store %arg12[%c7_20, %c4_21], %14 {strides = array<i32>} : memref<14x12xf32, #tpu.memory_space<vmem>>, vector<7x4xf32>,
    %c18 = arith.constant 18 : index
    %c0_22 = arith.constant 0 : index
    %16 = tpu.strided_load %arg9[%c18, %c0_22] {strides = array<i32: 2, 1>} : memref<32x4xf32, #tpu.memory_space<vmem>>, vector<7x4xf32>
    %c7_23 = arith.constant 7 : index
    %c8_24 = arith.constant 8 : index
    %17 = vector.load %arg12[%c7_23, %c8_24] : memref<14x12xf32, #tpu.memory_space<vmem>>, vector<7x4xf32>
    tpu.vector_store %arg12[%c7_23, %c8_24], %16 {strides = array<i32>} : memref<14x12xf32, #tpu.memory_space<vmem>>, vector<7x4xf32>,
    %c0_25 = arith.constant 0 : index
    %c0_26 = arith.constant 0 : index
    %18 = vector.load %arg2[%c0_25, %c0_26] : memref<12x8xbf16, #tpu.memory_space<vmem>>, vector<12x8xbf16>
    %c0_27 = arith.constant 0 : index
    %c0_28 = arith.constant 0 : index
    %19 = vector.load %arg3[%c0_27, %c0_28] : memref<1x8xf32, #tpu.memory_space<vmem>>, vector<1x8xf32>
    %c0_29 = arith.constant 0 : index
    %c0_30 = arith.constant 0 : index
    %20 = vector.load %arg12[%c0_29, %c0_30] : memref<14x12xf32, #tpu.memory_space<vmem>>, vector<14x12xf32>
    %21 = arith.truncf %20 : vector<14x12xf32> to vector<14x12xbf16>
    %cst = arith.constant dense<0.000000e+00> : vector<14x8xf32>
    %22 = tpu.matmul %21, %18, %cst {dimension_numbers = #tpu.dot_dimension_numbers<[1], [0], [0], [1], [0, 0, 1, 1], [], []>} : vector<14x12xbf16>, vector<12x8xbf16>, vector<14x8xf32> -> vector<14x8xf32>
    %23 = vector.broadcast %19 : vector<1x8xf32> to vector<14x8xf32>
    %24 = arith.addf %22, %23 : vector<14x8xf32>
    %cst_31 = arith.constant 0.000000e+00 : f32
    %25 = vector.broadcast %cst_31 : f32 to vector<14x8xf32>
    %26 = arith.maximumf %24, %25 : vector<14x8xf32>
    %c0_32 = arith.constant 0 : index
    %c0_33 = arith.constant 0 : index
    %27 = vector.load %arg10[%c0_32, %c0_33] : memref<14x8xf32, #tpu.memory_space<vmem>>, vector<14x8xf32>
    tpu.vector_store %arg10[%c0_32, %c0_33], %26 {strides = array<i32>} : memref<14x8xf32, #tpu.memory_space<vmem>>, vector<14x8xf32>,
    %c0_34 = arith.constant 0 : index
    %c0_35 = arith.constant 0 : index
    %28 = tpu.strided_load %arg10[%c0_34, %c0_35] {strides = array<i32: 2, 1>} : memref<14x8xf32, #tpu.memory_space<vmem>>, vector<3x8xf32>
    %c0_36 = arith.constant 0 : index
    %c0_37 = arith.constant 0 : index
    %29 = vector.load %arg13[%c0_36, %c0_37] : memref<6x24xf32, #tpu.memory_space<vmem>>, vector<3x8xf32>
    tpu.vector_store %arg13[%c0_36, %c0_37], %28 {strides = array<i32>} : memref<6x24xf32, #tpu.memory_space<vmem>>, vector<3x8xf32>,
    %c1_38 = arith.constant 1 : index
    %c0_39 = arith.constant 0 : index
    %30 = tpu.strided_load %arg10[%c1_38, %c0_39] {strides = array<i32: 2, 1>} : memref<14x8xf32, #tpu.memory_space<vmem>>, vector<3x8xf32>
    %c0_40 = arith.constant 0 : index
    %c8_41 = arith.constant 8 : index
    %31 = vector.load %arg13[%c0_40, %c8_41] : memref<6x24xf32, #tpu.memory_space<vmem>>, vector<3x8xf32>
    tpu.vector_store %arg13[%c0_40, %c8_41], %30 {strides = array<i32>} : memref<6x24xf32, #tpu.memory_space<vmem>>, vector<3x8xf32>,
    %c2_42 = arith.constant 2 : index
    %c0_43 = arith.constant 0 : index
    %32 = tpu.strided_load %arg10[%c2_42, %c0_43] {strides = array<i32: 2, 1>} : memref<14x8xf32, #tpu.memory_space<vmem>>, vector<3x8xf32>
    %c0_44 = arith.constant 0 : index
    %c16_45 = arith.constant 16 : index
    %33 = vector.load %arg13[%c0_44, %c16_45] : memref<6x24xf32, #tpu.memory_space<vmem>>, vector<3x8xf32>
    tpu.vector_store %arg13[%c0_44, %c16_45], %32 {strides = array<i32>} : memref<6x24xf32, #tpu.memory_space<vmem>>, vector<3x8xf32>,
    %c7_46 = arith.constant 7 : index
    %c0_47 = arith.constant 0 : index
    %34 = tpu.strided_load %arg10[%c7_46, %c0_47] {strides = array<i32: 2, 1>} : memref<14x8xf32, #tpu.memory_space<vmem>>, vector<3x8xf32>
    %c3 = arith.constant 3 : index
    %c0_48 = arith.constant 0 : index
    %35 = vector.load %arg13[%c3, %c0_48] : memref<6x24xf32, #tpu.memory_space<vmem>>, vector<3x8xf32>
    tpu.vector_store %arg13[%c3, %c0_48], %34 {strides = array<i32>} : memref<6x24xf32, #tpu.memory_space<vmem>>, vector<3x8xf32>,
    %c8_49 = arith.constant 8 : index
    %c0_50 = arith.constant 0 : index
    %36 = tpu.strided_load %arg10[%c8_49, %c0_50] {strides = array<i32: 2, 1>} : memref<14x8xf32, #tpu.memory_space<vmem>>, vector<3x8xf32>
    %c3_51 = arith.constant 3 : index
    %c8_52 = arith.constant 8 : index
    %37 = vector.load %arg13[%c3_51, %c8_52] : memref<6x24xf32, #tpu.memory_space<vmem>>, vector<3x8xf32>
    tpu.vector_store %arg13[%c3_51, %c8_52], %36 {strides = array<i32>} : memref<6x24xf32, #tpu.memory_space<vmem>>, vector<3x8xf32>,
    %c9 = arith.constant 9 : index
    %c0_53 = arith.constant 0 : index
    %38 = tpu.strided_load %arg10[%c9, %c0_53] {strides = array<i32: 2, 1>} : memref<14x8xf32, #tpu.memory_space<vmem>>, vector<3x8xf32>
    %c3_54 = arith.constant 3 : index
    %c16_55 = arith.constant 16 : index
    %39 = vector.load %arg13[%c3_54, %c16_55] : memref<6x24xf32, #tpu.memory_space<vmem>>, vector<3x8xf32>
    tpu.vector_store %arg13[%c3_54, %c16_55], %38 {strides = array<i32>} : memref<6x24xf32, #tpu.memory_space<vmem>>, vector<3x8xf32>,
    %c0_56 = arith.constant 0 : index
    %c0_57 = arith.constant 0 : index
    %40 = vector.load %arg4[%c0_56, %c0_57] : memref<24x16xbf16, #tpu.memory_space<vmem>>, vector<24x16xbf16>
    %c0_58 = arith.constant 0 : index
    %c0_59 = arith.constant 0 : index
    %41 = vector.load %arg5[%c0_58, %c0_59] : memref<1x16xf32, #tpu.memory_space<vmem>>, vector<1x16xf32>
    %c0_60 = arith.constant 0 : index
    %c0_61 = arith.constant 0 : index
    %42 = vector.load %arg13[%c0_60, %c0_61] : memref<6x24xf32, #tpu.memory_space<vmem>>, vector<6x24xf32>
    %43 = arith.truncf %42 : vector<6x24xf32> to vector<6x24xbf16>
    %cst_62 = arith.constant dense<0.000000e+00> : vector<6x16xf32>
    %44 = tpu.matmul %43, %40, %cst_62 {dimension_numbers = #tpu.dot_dimension_numbers<[1], [0], [0], [1], [0, 0, 1, 1], [], []>} : vector<6x24xbf16>, vector<24x16xbf16>, vector<6x16xf32> -> vector<6x16xf32>
    %45 = vector.broadcast %41 : vector<1x16xf32> to vector<6x16xf32>
    %46 = arith.addf %44, %45 : vector<6x16xf32>
    %cst_63 = arith.constant 0.000000e+00 : f32
    %47 = vector.broadcast %cst_63 : f32 to vector<6x16xf32>
    %48 = arith.maximumf %46, %47 : vector<6x16xf32>
    %c0_64 = arith.constant 0 : index
    %c0_65 = arith.constant 0 : index
    %49 = vector.load %arg11[%c0_64, %c0_65] : memref<6x16xf32, #tpu.memory_space<vmem>>, vector<6x16xf32>
    tpu.vector_store %arg11[%c0_64, %c0_65], %48 {strides = array<i32>} : memref<6x16xf32, #tpu.memory_space<vmem>>, vector<6x16xf32>,
    %c0_66 = arith.constant 0 : index
    %c0_67 = arith.constant 0 : index
    %50 = tpu.strided_load %arg11[%c0_66, %c0_67] {strides = array<i32: 3, 1>} : memref<6x16xf32, #tpu.memory_space<vmem>>, vector<2x16xf32>
    %c1_68 = arith.constant 1 : index
    %c0_69 = arith.constant 0 : index
    %51 = tpu.strided_load %arg11[%c1_68, %c0_69] {strides = array<i32: 3, 1>} : memref<6x16xf32, #tpu.memory_space<vmem>>, vector<2x16xf32>
    %52 = arith.maximumf %50, %51 : vector<2x16xf32>
    %c2_70 = arith.constant 2 : index
    %c0_71 = arith.constant 0 : index
    %53 = tpu.strided_load %arg11[%c2_70, %c0_71] {strides = array<i32: 3, 1>} : memref<6x16xf32, #tpu.memory_space<vmem>>, vector<2x16xf32>
    %54 = arith.maximumf %52, %53 : vector<2x16xf32>
    %55 = arith.truncf %54 : vector<2x16xf32> to vector<2x16xbf16>
    %c0_72 = arith.constant 0 : index
    %c0_73 = arith.constant 0 : index
    %56 = vector.load %arg6[%c0_72, %c0_73] : memref<16x32xbf16, #tpu.memory_space<vmem>>, vector<16x32xbf16>
    %cst_74 = arith.constant dense<0.000000e+00> : vector<2x32xf32>
    %57 = tpu.matmul %55, %56, %cst_74 {dimension_numbers = #tpu.dot_dimension_numbers<[1], [0], [0], [1], [0, 0, 1, 1], [], []>} : vector<2x16xbf16>, vector<16x32xbf16>, vector<2x32xf32> -> vector<2x32xf32>
    %c0_75 = arith.constant 0 : index
    %c0_76 = arith.constant 0 : index
    %58 = vector.load %arg7[%c0_75, %c0_76] : memref<1x32xf32, #tpu.memory_space<vmem>>, vector<1x32xf32>
    %59 = vector.broadcast %58 : vector<1x32xf32> to vector<2x32xf32>
    %60 = arith.addf %57, %59 : vector<2x32xf32>
    %c0_77 = arith.constant 0 : index
    %c0_78 = arith.constant 0 : index
    %c0_79 = arith.constant 0 : index
    %61 = vector.load %arg8[%c0_77, %c0_78, %c0_79] : memref<1x2x32xf32, #tpu.memory_space<vmem>>, vector<1x2x32xf32>
    %62 = vector.shape_cast %61 : vector<1x2x32xf32> to vector<2x32xf32>
    %63 = vector.shape_cast %60 : vector<2x32xf32> to vector<1x2x32xf32>
    tpu.vector_store %arg8[%c0_77, %c0_78, %c0_79], %63 {strides = array<i32>} : memref<1x2x32xf32, #tpu.memory_space<vmem>>, vector<1x2x32xf32>,
    return
  }
  func.func @transform_0(%arg0: i32) -> (i32, i32, i32) {
    %c0_i32 = arith.constant 0 : i32
    %c0_i32_0 = arith.constant 0 : i32
    %c0_i32_1 = arith.constant 0 : i32
    return %arg0, %c0_i32, %c0_i32_0 : i32, i32, i32
  }
  func.func @transform_1(%arg0: i32) -> (i32, i32) {
    %c0_i32 = arith.constant 0 : i32
    %c0_i32_0 = arith.constant 0 : i32
    %c0_i32_1 = arith.constant 0 : i32
    return %c0_i32, %c0_i32_0 : i32, i32
  }
  func.func @transform_2(%arg0: i32) -> (i32, i32) {
    %c0_i32 = arith.constant 0 : i32
    %c0_i32_0 = arith.constant 0 : i32
    %c0_i32_1 = arith.constant 0 : i32
    return %c0_i32, %c0_i32_0 : i32, i32
  }
  func.func @transform_3(%arg0: i32) -> (i32, i32) {
    %c0_i32 = arith.constant 0 : i32
    %c0_i32_0 = arith.constant 0 : i32
    %c0_i32_1 = arith.constant 0 : i32
    return %c0_i32, %c0_i32_0 : i32, i32
  }
  func.func @transform_4(%arg0: i32) -> (i32, i32) {
    %c0_i32 = arith.constant 0 : i32
    %c0_i32_0 = arith.constant 0 : i32
    %c0_i32_1 = arith.constant 0 : i32
    return %c0_i32, %c0_i32_0 : i32, i32
  }
  func.func @transform_5(%arg0: i32) -> (i32, i32) {
    %c0_i32 = arith.constant 0 : i32
    %c0_i32_0 = arith.constant 0 : i32
    %c0_i32_1 = arith.constant 0 : i32
    return %c0_i32, %c0_i32_0 : i32, i32
  }
  func.func @transform_6(%arg0: i32) -> (i32, i32) {
    %c0_i32 = arith.constant 0 : i32
    %c0_i32_0 = arith.constant 0 : i32
    %c0_i32_1 = arith.constant 0 : i32
    return %c0_i32, %c0_i32_0 : i32, i32
  }
  func.func @transform_7(%arg0: i32) -> (i32, i32, i32) {
    %c0_i32 = arith.constant 0 : i32
    %c0_i32_0 = arith.constant 0 : i32
    %c0_i32_1 = arith.constant 0 : i32
    return %arg0, %c0_i32, %c0_i32_0 : i32, i32, i32
  }
}

</mosaic_0001>

<bundles_post_ra>
// kernel: tpu_custom_call.1
= control target key start
LH: loop header
LB: loop body
LE: loop exit
PB: predicated region body
PF: predicated region fallthrough
CT: control target
= control target key end

     0   :  { %12 = vsyncpa [#allocation8], 0  ;;  %s988_s0 = inlined_call_operand.vmem [shape: f32[4,16,4], index: 0, kind: input, shape index: {}]   ;;  %s989_s1 = inlined_call_operand.vmem [shape: bf16[12,8], index: 1, kind: input, shape index: {}]   ;;  %s990_s2 = inlined_call_operand.vmem [shape: f32[1,8], index: 2, kind: input, shape index: {}]   ;;  %s991_s3 = inlined_call_operand.vmem [shape: bf16[24,16], index: 3, kind: input, shape index: {}]   ;;  %s992_s4 = inlined_call_operand.vmem [shape: f32[1,16], index: 4, kind: input, shape index: {}]   ;;  %s993_s5 = inlined_call_operand.vmem [shape: bf16[16,32], index: 5, kind: input, shape index: {}]   ;;  %s994_s6 = inlined_call_operand.vmem [shape: f32[1,32], index: 6, kind: input, shape index: {}]   ;;  %s995_s7 = inlined_call_operand.hbm [shape: f32[2,2,32], index: 7, kind: output, shape index: {}]  }
   0x1   :  { %14 = vsyncpa [#allocation8 + $0x1], 0  ;;  %s861_s24 = smov 0   ;;  %s863_s25 = smov 0  }
   0x2   :  { %s865_s26 = smov 0   ;;  %s867_s27 = smov 0  }
   0x3 LB: > { %s882_s28 = sadd.s32 4294967295, %s813_s27   ;;  %s651_s29 = sadd.s32 4294967294, %s813_s27   ;;  %s813_s27 = sphi %s867_s27, %s1001_s27   ;;  %s809_s26 = sphi %s865_s26, %s1000_s26   ;;  %s805_s25 = sphi %s863_s25, %s999_s25   ;;  %s801_s24 = sphi %s861_s24, %s998_s24  }
   0x4   : > { %s886_s30 = sadd.s32 1, %s813_s27   ;;  %s179_s8 = sadd.s32 1, %s809_s26 }
   0x5   : > { %s176_s9 = ssub.s32 %s813_s27, %s886_s30  ;;  %p189_p0 = scmp.ne.s32.totalorder %s809_s26, %s805_s25 }
   0x6   : > { %p177_p1 = scmp.eq.s32.totalorder %s176_s9, 0  ;;  %p190_p2 = scmp.eq.s32.totalorder %s882_s28, 1 }
   0x7   : > { %p195_p3 = scmp.ne.s32.totalorder %s805_s25, %s801_s24  ;;  %p196_p4 = scmp.eq.s32.totalorder %s651_s29, 1 }
   0x8   : > { %s897_s10 = scalar_select %p177_p1, %s809_s26, %s179_s8  }
   0x9   : > { %p899_p5 = por %p190_p2, %p189_p0  ;;  %p903_p6 = por %p196_p4, %p195_p3 }
   0xa   : > { %p654_p7 = scmp.ge.s32.totalorder %s813_s27, 1  ;;  %p242_p8 = scmp.lt.s32.totalorder %s813_s27, 3 }
   0xc   : > { %p243_p9 = pnand %p654_p7, %p242_p8 }
   0xd   : > { %s656_s13 = sshll.u32 (!%p243_p9), %s882_s28, 1  ;;  %vm285_vm0 = vcmask (!%p243_p9), 31744   ;;  %v747_v4 = vld [vmem:[%s989_s1] sm:$0x3f] (!%p243_p9)   ;;  %vm350_vm1 = vcmask (!%p243_p9), 1045504   ;;  %v815_v5 = vmov (!%p243_p9), 0.0  }
   0xe   : > { %246 = sbr.rel (%p243_p9) target bundleno = 976 (0x3d0), region = 48  ;;  %p276_p10 = scmp.lt.s32.totalorder (!%p243_p9), %s656_s13, 3  ;;  %683 = vmatprep.subr.bf16.mxu0 (!%p243_p9), %v815_v5  ;;  %vm816_vm2 = vmmov (!%p243_p9), 0   ;;  %v352_v6 = vsel (!%p243_p9), %vm350_vm1, %v747_v4, 0  ;;  %689 = vmatprep.subr.bf16.mxu1 (!%p243_p9), %v815_v5  ;;  %vm294_vm3 = vcmask (!%p243_p9), 30720   ;;  %vm302_vm4 = vcmask (!%p243_p9), 63520  }
   0xf   : > { %685 = vmatprep.mubr.msk.bf16.mxu0 (!%p243_p9), %vm816_vm2, %v815_v5  ;;  %693 = vmatprep.mubr.msk.bf16.mxu1 (!%p243_p9), %vm816_vm2, %v815_v5  ;;  %s817_s20 = smov (!%p243_p9), 4   ;;  %s818_s21 = smov (!%p243_p9), 8   ;;  %vm310_vm5 = vcmask (!%p243_p9), 96320   ;;  %vm346_vm6 = vcmask (!%p243_p9), 97280   ;;  %v661_v20 = vld [vmem:[%s990_s2] ss:$0 sm:$0xff] (!%p243_p9) }
  0x10   : > { %684 = vmatpush3.bf16.msra.mxu0 (!%p243_p9), %v352_v6  ;;  %vm397_vm7 = vcmask (!%p243_p9), 64512   ;;  %vm399_vm8 = vcmask (!%p243_p9), 62464   ;;  %v748_v29 = vld [vmem:[%s991_s3] sm:$0xff] (!%p243_p9)   ;;  %v749_v30 = vld [vmem:[%s991_s3 + $0x8] ss:$0 sps:$4 sm:$0xff] (!%p243_p9)   ;;  %vm462_vm9 = vcmask (!%p243_p9), 1043456  }
  0x11   : > { %697 = vmatprep.subr.bf16.mxu0 (!%p243_p9), %v815_v5  ;;  %690 = vmatpush3.bf16.msra.mxu1 (!%p243_p9), %v748_v29  ;;  %v464_v31 = vsel (!%p243_p9), %vm462_vm9, %v749_v30, 0  ;;  %vm402_vm10 = vcmask (!%p243_p9), 59392   ;;  %vm410_vm11 = vcmask (!%p243_p9), 124992   ;;  %vm418_vm12 = vcmask (!%p243_p9), 190592   ;;  %v750_v44 = vld [vmem:[%s993_s5] sm:$0xff] (!%p243_p9)   ;;  %s272_s19 = sand.u32 (!%p243_p9), 1, %s805_s25  }
  0x12   : > { %691 = vmatprep.subr.bf16.mxu1 (!%p243_p9), %v815_v5  ;;  %vm458_vm13 = vcmask (!%p243_p9), 195584   ;;  %v664_v45 = vld [vmem:[%s992_s4] ss:$0 sm:$0xff] (!%p243_p9)  ;;  %vm507_vm14 = vcmask (!%p243_p9), 128000   ;;  %vm532_vm15 = vcmask (!%p243_p9), 130048   ;;  %s672_s23 = sshll.u32 (!%p243_p9), %s882_s28, 5 }
  0x13   : > { %v668_v58 = vld [vmem:[%s994_s6] ss:$0 sm:$0xff] (!%p243_p9)  ;;  %s579_s28 = scalar_lea.sflag (!%p243_p9), [#allocation8], %s272_s19  ;;  %s820_s16 = smov (!%p243_p9), [#allocation7]  }
  0x15   : > { %s1003_s13 = smov (!%p276_p10, %s656_s13), 3  ;;  %692 = vmatpush3.bf16.msra.mxu1 %v464_v31 }
  0x16   : > { %s675_s14 = sshll.u32 %s1003_s13, 4 }
  0x17   : > { %s280_s17 = scalar_lea.vmem %s988_s0, %s675_s14  ;;  %s819_s14 = smov 16  }
  0x18   : > { %v283_v0 = vld [vmem:[%s280_s17] sm:$0xff]  ;;  %v284_v1 = vld [vmem:[%s280_s17 + $0x8] sm:$0xff]  ;;  %v659_v2 = vld [vmem:[%s280_s17 + $0x10] sm:$0xff] }
  0x19   : > { %286 = vst.msk [vmem:[#allocation2] sm:$0xff] %vm285_vm0, %v283_v0  ;;  %287 = vst.msk [vmem:[#allocation2 + $0x8] sm:$0xff] %vm285_vm0, %v284_v1  ;;  %v660_v3 = vld [vmem:[%s280_s17 + $0x18] sm:$0xff]  ;;  %s755_s17 = sshll.u32 %s820_s16, 4  ;;  %s756_s17 = int_to_ptr.vmem [resolvable:$false] %s755_s17 }
  0x1a   : > { %291 = vst.msk [vmem:[#allocation2 + $0x10] sm:$0xff] %vm285_vm0, %v659_v2  ;;  %292 = vst.msk [vmem:[#allocation2 + $0x18] sm:$0xff] %vm285_vm0, %v660_v3  ;;  %vm576_vm0 = vcmask 254976   ;;  %s757_s18 = scalar_lea.vmem %s756_s17, 64 }
  0x20   : > { %v297_v7 = vld [vmem:[#allocation2 + $0x1] ss:$2 sm:$0x7f]  ;;  %v305_v8 = vld [vmem:[#allocation2 + $0x2] ss:$2 sm:$0x7f] }
  0x21   : > { %299 = vrot.lane.b32.xlu0 %v297_v7, %s817_s20  ;;  %307 = vrot.lane.b32.xlu1 %v305_v8, %s818_s21  ;;  %v316_v9 = vld [vmem:[#allocation2 + $0x11] ss:$2 sm:$0x7f]  ;;  %v323_v10 = vld [vmem:[#allocation2 + $0x12] ss:$2 sm:$0x7f] }
  0x22   : > { %v293_v11 = vld [vmem:[#allocation2] ss:$2 sm:$0x7f]  ;;  %v313_v12 = vld [vmem:[#allocation2 + $0x10] ss:$2 sm:$0x7f] }
  0x23   : > { %295 = vst.msk [vmem:[#allocation5] sm:$0x7f] %vm294_vm3, %v293_v11  ;;  %314 = vst.msk [vmem:[#allocation5 + $0x7] sm:$0x7f] %vm294_vm3, %v313_v12 }
  0x25   : > { %318 = vrot.lane.b32.xlu0 %v316_v9, %s817_s20  ;;  %325 = vrot.lane.b32.xlu1 %v323_v10, %s818_s21  ;;  %s655_s20 = sshll.u32 %s272_s19, 1 }
  0x26   : > { %s274_s29 = scalar_lea.vmem [#allocation7], %s655_s20 }
  0x27   : > { %s592_s8 = sshll.u32 %s274_s29, 4  ;;  %s948_s8 = int_to_ptr.vmem [resolvable:$true] %s592_s8 }
  0x28   : > { %s751_s15 = scalar_lea.vmem %s948_s8, 32  ;;  %p758_p0 = scmp.lt.s32.totalorder %s948_s8, %s756_s17 }
  0x29   : > { %p752_p11 = scmp.ne.s32.totalorder %s948_s8, %s751_s15  ;;  %p759_p1 = scmp.lt.s32.totalorder %s757_s18, %s751_s15 }
  0x2b   : > { %p753_p12 = pnand %p752_p11, %p899_p5  ;;  %p760_p2 = por %p759_p1, %p758_p0 }
  0x2d   : > { %p754_p13 = pneg %p753_p12 }
  0x2f   : > { %p761_p3 = pnand %p760_p2, %p754_p13 }
  0x93   : > { %v300_v13 = vpop.permute.xlu0 %299  ;;  %v308_v14 = vpop.permute.xlu1 %307 }
  0x94   : > { %303 = vst.msk [vmem:[#allocation5] sm:$0x7f] %vm302_vm4, %v300_v13 }
  0x95   : > { %311 = vst.msk [vmem:[#allocation5] sm:$0x7f] %vm310_vm5, %v308_v14 }
  0x97   : > { %v319_v15 = vpop.permute.xlu0 %318  ;;  %v326_v16 = vpop.permute.xlu1 %325 }
  0x98   : > { %321 = vst.msk [vmem:[#allocation5 + $0x7] sm:$0x7f] %vm302_vm4, %v319_v15 }
  0x99   : > { %328 = vst.msk [vmem:[#allocation5 + $0x7] sm:$0x7f] %vm310_vm5, %v326_v16 }
  0xa0   : > { %v332_v17 = vld [vmem:[#allocation5] sm:$0xff]  ;;  %v333_v18 = vld [vmem:[#allocation5 + $0x8] sm:$0x3f] }
  0xa1   : > { %v334_v19 = vpack.c.bf16 %v333_v18, %v332_v17 }
  0xa3   : > { %686 = vmatmul.mubr.msk.bf16.vlgmr.msra.gmra.mrb[0].mxu0 %vm346_vm6, %v334_v19 }
  0xa4   : > { %699 = vmatprep.mubr.msk.bf16.mxu0 %vm816_vm2, %v815_v5  ;;  %698 = vmatpush3.bf16.msra.mxu0 %v750_v44 }
 0x176   : > { %v388_v21 = vpop.f32.mrb[0].mxu0 }
 0x177   : > { %v389_v22 = vadd.f32 %v661_v20, %v388_v21  ;;  %v687_v23 = vpop.f32.mrb[1].mxu0 }
 0x178   : > { %v391_v24 = vpop.f32.mrb[2].mxu0 }
 0x179   : > { %v395_v25 = vmax.f32 %v389_v22, 0.0  ;;  %v392_v26 = vadd.f32 %v661_v20, %v391_v24  ;;  %v688_v27 = vpop.f32.mrb[3].mxu0 }
 0x17b   : > { %398 = vst.msk [vmem:[#allocation3] sm:$0xff] %vm397_vm7, %v395_v25  ;;  %v396_v28 = vmax.f32 %v392_v26, 0.0 }
 0x17d   : > { %400 = vst.msk [vmem:[#allocation3 + $0x8] sm:$0x3f] %vm399_vm8, %v396_v28 }
 0x182   : > { %v405_v32 = vld [vmem:[#allocation3 + $0x1] ss:$2 sm:$0x7]  ;;  %v401_v33 = vld [vmem:[#allocation3] ss:$2 sm:$0x7] }
 0x183   : > { %407 = vrot.lane.b32.xlu0 %v405_v32, %s818_s21  ;;  %403 = vst.msk [vmem:[#allocation6] sm:$0x7] %vm402_vm10, %v401_v33  ;;  %v413_v36 = vld [vmem:[#allocation3 + $0x2] ss:$2 sm:$0x7] }
 0x184   : > { %v424_v34 = vld [vmem:[#allocation3 + $0x8] ss:$2 sm:$0x7]  ;;  %v421_v35 = vld [vmem:[#allocation3 + $0x7] ss:$2 sm:$0x7] }
 0x185   : > { %426 = vrot.lane.b32.xlu1 %v424_v34, %s818_s21  ;;  %422 = vst.msk [vmem:[#allocation6 + $0x3] sm:$0x7] %vm402_vm10, %v421_v35  ;;  %v431_v37 = vld [vmem:[#allocation3 + $0x9] ss:$2 sm:$0x7] }
 0x187   : > { %415 = vrot.lane.b32.xlu0 %v413_v36, %s819_s14 }
 0x189   : > { %433 = vrot.lane.b32.xlu1 %v431_v37, %s819_s14  ;;  %s946_s14 = scalar_lea.hbm %s995_s7, %s672_s23 }
 0x1f5   : > { %v408_v38 = vpop.permute.xlu0 %407 }
 0x1f6   : > { %411 = vst.msk [vmem:[#allocation6] sm:$0x7] %vm410_vm11, %v408_v38 }
 0x1f7   : > { %v427_v39 = vpop.permute.xlu1 %426 }
 0x1f8   : > { %429 = vst.msk [vmem:[#allocation6 + $0x3] sm:$0x7] %vm410_vm11, %v427_v39 }
 0x1f9   : > { %v416_v40 = vpop.permute.xlu0 %415 }
 0x1fa   : > { %419 = vst.msk [vmem:[#allocation6] sm:$0x7] %vm418_vm12, %v416_v40 }
 0x1fb   : > { %v434_v41 = vpop.permute.xlu1 %433 }
 0x1fc   : > { %436 = vst.msk [vmem:[#allocation6 + $0x3] sm:$0x7] %vm418_vm12, %v434_v41 }
 0x203   : > { %v441_v42 = vld [vmem:[#allocation6] sm:$0x3f] }
 0x204   : > { %v442_v43 = vpack.c.bf16 %v441_v42, %v441_v42 }
 0x206   : > { %694 = vmatmul.mubr.msk.bf16.vlgmr.msra.gmra.mrb[0].mxu1 %vm458_vm13, %v442_v43 }
 0x2d9   : > { %v500_v46 = vpop.f32.mrb[0].mxu1 }
 0x2da   : > { %v501_v47 = vadd.f32 %v664_v45, %v500_v46  ;;  %v695_v48 = vpop.f32.mrb[1].mxu1 }
 0x2db   : > { %v503_v49 = vpop.f32.mrb[2].mxu1 }
 0x2dc   : > { %v506_v50 = vmax.f32 %v501_v47, 0.0  ;;  %v696_v51 = vpop.f32.mrb[3].mxu1 }
 0x2de   : > { %508 = vst.msk [vmem:[#allocation4] sm:$0x3f] %vm507_vm14, %v506_v50 }
 0x2e5   : > { %v509_v52 = vld [vmem:[#allocation4] ss:$3 sm:$0x3]  ;;  %v511_v53 = vld [vmem:[#allocation4 + $0x1] ss:$3 sm:$0x3] }
 0x2e6   : > { %v512_v54 = vmax.f32 %v509_v52, %v511_v53  ;;  %v514_v55 = vld [vmem:[#allocation4 + $0x2] ss:$3 sm:$0x3] }
 0x2e8   : > { %v515_v56 = vmax.f32 %v512_v54, %v514_v55 }
 0x2ea   : > { %v516_v57 = vpack.c.bf16 %v515_v56, %v515_v56 }
 0x2ec   : > { %700 = vmatmul.mubr.msk.bf16.vlgmr.msra.gmra.mrb[4].mxu0 %vm532_vm15, %v516_v57 }
 0x3bf   : > { %v570_v59 = vpop.f32.mrb[4].mxu0 }
 0x3c0   : > { %v571_v60 = vadd.f32 %v668_v58, %v570_v59  ;;  %v701_v61 = vpop.f32.mrb[5].mxu0 }
 0x3c1   : > { %v573_v62 = vpop.f32.mrb[6].mxu0 }
 0x3c2   : > { %v702_v63 = vpop.f32.mrb[7].mxu0  ;;  %577 = vst.msk [vmem:[%s274_s29] sm:$0x3] %vm576_vm0, %v571_v60 }
 0x3c3   : > { %764 = shalt.err (!%p761_p3)
}
 0x3c4   : > { %s765_s19 = scalar_lea.hbm %s946_s14, 32  ;;  %s769_s22 = scalar_lea.hbm %s995_s7, 64 }
 0x3c5   : > { %p766_p4 = scmp.ne.s32.totalorder %s946_s14, %s765_s19  ;;  %p770_p9 = scmp.lt.u32.totalorder %s946_s14, %s995_s7 }
 0x3c6   : > { %p771_p10 = scmp.lt.u32.totalorder %s769_s22, %s765_s19  ;;  %p773_p12 = scmp.lt.u32.totalorder %s765_s19, %s946_s14 }
 0x3c7   : > { %p767_p7 = pnand %p766_p4, %p899_p5 }
 0x3c8   : > { %p772_p11 = por %p771_p10, %p770_p9 }
 0x3c9   : > { %p768_p8 = pneg %p767_p7 }
 0x3ca   : > { %p774_p13 = por %p773_p12, %p772_p11 }
 0x3cc   : > { %p775_p0 = pnand %p774_p13, %p768_p8 }
 0x3ce   : > { %778 = shalt.err (!%p775_p0)
}
 0x3cf   : > { %703 = dma.vmem_to_hbm [thread:$0]  (%p899_p5), %s948_s8, 32, %s946_s14, %s579_s28  }
 0x3d0 PF: > { %p709_p1 = scmp.ge.s32.totalorder %s813_s27, 2  ;;  %s604_s9 = sand.u32 1, %s801_s24  }
 0x3d1   : > { %s605_s13 = scalar_lea.sflag [#allocation8], %s604_s9 }
 0x3d2   : > { %p706_p2 = pnand %p709_p1, %p903_p6 }
 0x3d4   : > { %796 = dma.done.wait (!%p706_p2), %s605_s13, 32  }
 0x3d5   : > { %798 = vsyncadd (!%p706_p2), %s605_s13, 4294967264  ;;  %p17_p3 = scmp.ge.s32.totalorder %s886_s30, 4   ;;  %s998_s24 = smov %s805_s25 }
 0x3d6   : > { %s999_s25 = smov %s809_s26  ;;  %s1000_s26 = smov %s897_s10 }
 0x3d7   : > { %s1001_s27 = smov %s886_s30  ;;  %19 = sbr.rel (!%p17_p3) target bundleno = 3 (0x3), region = 96 }
 0x3de   :  { %610 = vsyncpa [#allocation8], 1 }
 0x3df   :  { %612 = vsyncpa [#allocation8 + $0x1], 1 }

</bundles_post_ra>
